<compile_context>
chip_gen: v5e
topology: v5e:2x2
jax: 0.10.0
libtpu: 0.0.40
codegen_flags: <defaults>
</compile_context>

<pallas_src>
import functools

import jax
import jax.numpy as jnp
from jax.experimental import pallas as pl
from jax.experimental.pallas import tpu as pltpu


# --------------------------------------------------------------------------------------
# Kernel
# --------------------------------------------------------------------------------------
def _res_layer_kernel(x_ref, w1_ref, b1_ref, w2_ref, b2_ref, *rest,
                      use_mask: bool, acc_in_out: bool):
    """Grid = (batch tile i, hidden-dim chunk j).  j is the reduction ("arbitrary") axis."""
    if use_mask:
        mask_ref, rest = rest[0], rest[1:]
    else:
        mask_ref = None
    o_ref = rest[0]
    acc_ref = o_ref if acc_in_out else rest[1]

    j = pl.program_id(1)

    @pl.when(j == 0)
    def _init():
        acc_ref[...] = jnp.zeros_like(acc_ref)

    x = x_ref[...]                       # (tile_b, D)
    cdt = w1_ref.dtype                   # MXU input dtype (bf16 or f32), chosen in wrapper

    # ---- first linear: one (tile_b, tile_n) column-chunk of relu(x @ W1^T + b1) ----------
    y = jnp.dot(x.astype(cdt), w1_ref[...], preferred_element_type=jnp.float32)
    y = jnp.maximum(y + b1_ref[...], 0.0)

    # ---- dropout: precomputed bf16 mask holds 0 or 1/(1-p) -------------------------------
    if use_mask:
        y = y * mask_ref[...].astype(jnp.float32)

    # ---- second linear: this chunk is a K-slice of y @ W2^T; accumulate over j -----------
    acc_ref[...] += jnp.dot(y.astype(cdt), w2_ref[...], preferred_element_type=jnp.float32)

    # ---- finalize: bias + ReLU + residual -------------------------------------------------
    @pl.when(j == pl.num_programs(1) - 1)
    def _finalize():
        z = jnp.maximum(acc_ref[...] + b2_ref[...], 0.0)
        o_ref[...] = (x.astype(jnp.float32) + z).astype(o_ref.dtype)


# --------------------------------------------------------------------------------------
# Tile / VMEM heuristics
# --------------------------------------------------------------------------------------
def _vmem_capacity_bytes():
    try:
        cap = int(pltpu.get_tpu_info().vmem_capacity_bytes)
        if cap > 0:
            return cap
    except Exception:
        pass
    return 64 << 20          # conservative fallback = v7x per-TensorCore VMEM


def _tile_b_candidates(B):
    m128 = [t for t in range(512, 0, -128) if t <= B and B % t == 0]
    # Prefer >= 2 batch tiles so the "parallel" axis can be split across v7x's 2 TensorCores.
    cands = [t for t in m128 if B // t >= 2] + [t for t in m128 if B // t == 1]
    cands += [t for t in range(256, 0, -8) if t <= B and B % t == 0 and t not in m128]
    if B not in cands:
        cands.append(B)
    seen, out = set(), []
    for t in cands:
        if t not in seen:
            seen.add(t)
            out.append(t)
    return out


def _tile_n_candidates(D):
    # Full D first: makes the weight BlockSpecs grid-invariant (weights fetched once/call).
    return [D] + [t for t in range(1024, 127, -128) if t < D and D % t == 0]


def _footprint_bytes(tb, tn, D, x_isz, w_isz, out_isz, use_mask, mask_isz, acc_in_out):
    dbl = 2                                    # BlockSpec double-buffering
    need = (dbl * tb * D * x_isz               # x tile
            + dbl * D * tn * w_isz             # W1^T column chunk
            + dbl * tn * D * w_isz             # W2^T K-slice
            + dbl * tn * 4 + dbl * D * 4       # bias chunks (f32)
            + dbl * tb * D * out_isz)          # output tile
    if use_mask:
        need += dbl * tb * tn * mask_isz       # dropout mask tile (bf16)
    if not acc_in_out:
        need += tb * D * 4                     # f32 accumulator scratch
    return need


def _choose_tiles(B, D, x_isz, w_isz, out_isz, use_mask, mask_isz, acc_in_out, budget):
    tb_cands = _tile_b_candidates(B)
    tn_cands = _tile_n_candidates(D)
    for tb in tb_cands:
        for tn in tn_cands:
            if _footprint_bytes(tb, tn, D, x_isz, w_isz, out_isz,
                                use_mask, mask_isz, acc_in_out) <= budget:
                return tb, tn
    return tb_cands[-1], tn_cands[-1]


# --------------------------------------------------------------------------------------
# Wrapper
# --------------------------------------------------------------------------------------
def res_layer(x, w1, b1, w2, b2, *, training=False, drop_p=0.5, rng_key=None,
              weight_dtype=None, tile_b=None, tile_n=None):
    """x: (B, D).  w1, w2: (D, D) in PyTorch (out, in) layout.  b1, b2: (D,).

    weight_dtype: MXU input dtype for the weights (jnp.bfloat16 halves the weight HBM stream
    and VMEM footprint; accumulation stays f32).  None keeps the supplied weight dtype.
    """
    B, D = x.shape
    assert w1.shape == (D, D) and w2.shape == (D, D)

    w_dt = jnp.dtype(weight_dtype) if weight_dtype is not None else jnp.dtype(w1.dtype)
    # One-time wrapper-side transpose to (in, out): both in-kernel matmuls are plain NN
    # contractions (K on RHS dim 0), so no per-step transposes or weight casts in-kernel.
    w1_t = jnp.asarray(w1, w_dt).T
    w2_t = jnp.asarray(w2, w_dt).T
    b1_r = jnp.asarray(b1, jnp.float32).reshape(1, D)
    b2_r = jnp.asarray(b2, jnp.float32).reshape(1, D)

    out_dtype = x.dtype
    acc_in_out = jnp.dtype(out_dtype) == jnp.dtype(jnp.float32)

    use_mask = bool(training) and drop_p > 0.0
    mask = None
    if use_mask:
        if rng_key is None:
            raise ValueError("training=True with drop_p>0 requires an explicit rng_key")
        if drop_p >= 1.0:
            mask = jnp.zeros((B, D), jnp.bfloat16)
        else:
            keep = jax.random.bernoulli(rng_key, 1.0 - drop_p, (B, D))
            mask = (keep.astype(jnp.float32) / (1.0 - drop_p)).astype(jnp.bfloat16)

    x_isz = jnp.dtype(x.dtype).itemsize
    w_isz = w_dt.itemsize
    out_isz = jnp.dtype(out_dtype).itemsize
    mask_isz = 2

    vmem_cap = _vmem_capacity_bytes()
    budget = int(vmem_cap * 0.7)               # headroom for Mosaic internal scratch

    auto_tb, auto_tn = _choose_tiles(B, D, x_isz, w_isz, out_isz,
                                     use_mask, mask_isz, acc_in_out, budget)
    if tile_b is None:
        tile_b = auto_tb
    if tile_n is None:
        tile_n = auto_tn
    assert B % tile_b == 0 and D % tile_n == 0

    inputs = [x, w1_t, b1_r, w2_t, b2_r]
    in_specs = [
        pl.BlockSpec((tile_b, D), lambda i, j: (i, 0)),    # x tile (full feature dim)
        pl.BlockSpec((D, tile_n), lambda i, j: (0, j)),    # W1^T column chunk
        pl.BlockSpec((1, tile_n), lambda i, j: (0, j)),    # b1 chunk
        pl.BlockSpec((tile_n, D), lambda i, j: (j, 0)),    # W2^T K-slice
        pl.BlockSpec((1, D),      lambda i, j: (0, 0)),    # b2 (full, used at finalize)
    ]
    if use_mask:
        inputs.append(mask)
        in_specs.append(pl.BlockSpec((tile_b, tile_n), lambda i, j: (i, j)))

    scratch_shapes = [] if acc_in_out else [pltpu.VMEM((tile_b, D), jnp.float32)]

    kernel = functools.partial(_res_layer_kernel, use_mask=use_mask, acc_in_out=acc_in_out)

    need = _footprint_bytes(tile_b, tile_n, D, x_isz, w_isz, out_isz,
                            use_mask, mask_isz, acc_in_out)
    vmem_limit = min(max(int(need * 1.25) + (4 << 20), 32 << 20), vmem_cap)

    n_btiles = B // tile_b
    weight_passes = 1 if tile_n == D else n_btiles     # grid-invariant weights fetched once
    flops = 2 * 2 * B * D * D
    bytes_accessed = (B * D * x_isz + B * D * out_isz
                      + weight_passes * 2 * D * D * w_isz
                      + weight_passes * 2 * D * 4)
    if use_mask:
        bytes_accessed += B * D * mask_isz

    return pl.pallas_call(
        kernel,
        out_shape=jax.ShapeDtypeStruct((B, D), out_dtype),
        grid_spec=pltpu.PrefetchScalarGridSpec(
            num_scalar_prefetch=0,
            grid=(n_btiles, D // tile_n),
            in_specs=in_specs,
            out_specs=pl.BlockSpec((tile_b, D), lambda i, j: (i, 0)),
            scratch_shapes=scratch_shapes,
        ),
        compiler_params=pltpu.CompilerParams(
            dimension_semantics=("parallel", "arbitrary"),
            vmem_limit_bytes=vmem_limit,
        ),
        cost_estimate=pl.CostEstimate(flops=flops, transcendentals=0,
                                      bytes_accessed=int(bytes_accessed)),
    )(*inputs)


def res_layer_ref(x, w1, b1, w2, b2, mask=None):
    """Pure-JAX reference (mask=None means eval-mode dropout identity)."""
    y = jnp.maximum(x @ w1.T + b1, 0.0)
    if mask is not None:
        y = y * mask
    y = jnp.maximum(y @ w2.T + b2, 0.0)
    return x + y


if __name__ == "__main__":
    # Small demo shape (batch=8, linear_size=32).  Note: far too small for a Pallas kernel to
    # beat fused XLA — real wins need D a multiple of 128 and B in the hundreds; the tiling
    # heuristics target those shapes.
    B, D = 8, 32

    key = jax.random.PRNGKey(0)
    kx, k1, kb1, k2, kb2, kdrop = jax.random.split(key, 6)

    x = jax.random.normal(kx, (B, D), dtype=jnp.float32)
    bound = 1.0 / (D ** 0.5)   # PyTorch Linear init range (weight (out,in), bias (out,))
    w1 = jax.random.uniform(k1, (D, D), jnp.float32, -bound, bound)
    b1 = jax.random.uniform(kb1, (D,), jnp.float32, -bound, bound)
    w2 = jax.random.uniform(k2, (D, D), jnp.float32, -bound, bound)
    b2 = jax.random.uniform(kb2, (D,), jnp.float32, -bound, bound)

    # --- eval mode, exact f32 matmuls ------------------------------------------------------
    out = jax.block_until_ready(res_layer(x, w1, b1, w2, b2, training=False))
    ref = res_layer_ref(x, w1, b1, w2, b2)
    assert jnp.allclose(out, ref, atol=1e-5, rtol=1e-5), "eval-mode mismatch vs reference"

    # --- training mode (dropout p=0.5), deterministic given rng_key -------------------------
    p = 0.5
    out_tr = jax.block_until_ready(
        res_layer(x, w1, b1, w2, b2, training=True, drop_p=p, rng_key=kdrop))
    mask = jax.random.bernoulli(kdrop, 1.0 - p, (B, D)).astype(jnp.float32) / (1.0 - p)
    ref_tr = res_layer_ref(x, w1, b1, w2, b2, mask=mask)
    assert jnp.allclose(out_tr, ref_tr, atol=1e-5, rtol=1e-5), "train-mode mismatch vs reference"

    # --- bf16 weight path (f32 accumulation), loose tolerance -------------------------------
    out_bf16 = jax.block_until_ready(
        res_layer(x, w1, b1, w2, b2, training=False, weight_dtype=jnp.bfloat16))
    assert jnp.allclose(out_bf16, ref, atol=1e-1, rtol=1e-1), "bf16 weight path diverged"

    print("KERNEL_OK")
</pallas_src>

<mosaic_0001>
module attributes {stable_mosaic.version = 11 : i64} {
  func.func @_res_layer_kernel(%arg0: i32, %arg1: i32, %arg2: memref<8x32xf32, #tpu.memory_space<vmem>>, %arg3: memref<32x32xf32, #tpu.memory_space<vmem>>, %arg4: memref<1x32xf32, #tpu.memory_space<vmem>>, %arg5: memref<32x32xf32, #tpu.memory_space<vmem>>, %arg6: memref<1x32xf32, #tpu.memory_space<vmem>>, %arg7: memref<8x32xf32, #tpu.memory_space<vmem>>) attributes {dimension_semantics = [#tpu.dimension_semantics<parallel>, #tpu.dimension_semantics<arbitrary>], iteration_bounds = array<i64: 1, 1>, scalar_prefetch = 0 : i64, scratch_operands = 0 : i64, tpu.core_type = #tpu.core_type<tc>, window_params = [{transform_indices = @transform_0, window_bounds = array<i64: 8, 32>}, {transform_indices = @transform_1, window_bounds = array<i64: 32, 32>}, {transform_indices = @transform_2, window_bounds = array<i64: 1, 32>}, {transform_indices = @transform_3, window_bounds = array<i64: 32, 32>}, {pipeline_mode = #tpu.pipeline_mode<synchronous>, transform_indices = @transform_4, window_bounds = array<i64: 1, 32>}, {transform_indices = @transform_5, window_bounds = array<i64: 8, 32>}]} {
    %c0_i32 = arith.constant 0 : i32
    %0 = arith.cmpi eq, %arg1, %c0_i32 : i32
    %1 = arith.extui %0 : i1 to i32
    %c0_i32_0 = arith.constant 0 : i32
    %2 = arith.cmpi ne, %1, %c0_i32_0 : i32
    scf.if %2 {
      %cst_16 = arith.constant 0.000000e+00 : f32
      %19 = vector.broadcast %cst_16 : f32 to vector<8x32xf32>
      %c0_17 = arith.constant 0 : index
      %c0_18 = arith.constant 0 : index
      %20 = vector.load %arg7[%c0_17, %c0_18] : memref<8x32xf32, #tpu.memory_space<vmem>>, vector<8x32xf32>
      tpu.vector_store %arg7[%c0_17, %c0_18], %19 {strides = array<i32>} : memref<8x32xf32, #tpu.memory_space<vmem>>, vector<8x32xf32>,
    } else {
    }
    %c0 = arith.constant 0 : index
    %c0_1 = arith.constant 0 : index
    %3 = vector.load %arg2[%c0, %c0_1] : memref<8x32xf32, #tpu.memory_space<vmem>>, vector<8x32xf32>
    %c0_2 = arith.constant 0 : index
    %c0_3 = arith.constant 0 : index
    %4 = vector.load %arg3[%c0_2, %c0_3] : memref<32x32xf32, #tpu.memory_space<vmem>>, vector<32x32xf32>
    %cst = arith.constant dense<0.000000e+00> : vector<8x32xf32>
    %5 = tpu.matmul %3, %4, %cst {dimension_numbers = #tpu.dot_dimension_numbers<[1], [0], [0], [1], [0, 0, 1, 1], [], []>} : vector<8x32xf32>, vector<32x32xf32>, vector<8x32xf32> -> vector<8x32xf32>
    %c0_4 = arith.constant 0 : index
    %c0_5 = arith.constant 0 : index
    %6 = vector.load %arg4[%c0_4, %c0_5] : memref<1x32xf32, #tpu.memory_space<vmem>>, vector<1x32xf32>
    %7 = vector.broadcast %6 : vector<1x32xf32> to vector<8x32xf32>
    %8 = arith.addf %5, %7 : vector<8x32xf32>
    %cst_6 = arith.constant 0.000000e+00 : f32
    %9 = vector.broadcast %cst_6 : f32 to vector<8x32xf32>
    %10 = arith.maximumf %8, %9 : vector<8x32xf32>
    %c0_7 = arith.constant 0 : index
    %c0_8 = arith.constant 0 : index
    %11 = vector.load %arg7[%c0_7, %c0_8] : memref<8x32xf32, #tpu.memory_space<vmem>>, vector<8x32xf32>
    %c0_9 = arith.constant 0 : index
    %c0_10 = arith.constant 0 : index
    %12 = vector.load %arg5[%c0_9, %c0_10] : memref<32x32xf32, #tpu.memory_space<vmem>>, vector<32x32xf32>
    %cst_11 = arith.constant dense<0.000000e+00> : vector<8x32xf32>
    %13 = tpu.matmul %10, %12, %cst_11 {dimension_numbers = #tpu.dot_dimension_numbers<[1], [0], [0], [1], [0, 0, 1, 1], [], []>} : vector<8x32xf32>, vector<32x32xf32>, vector<8x32xf32> -> vector<8x32xf32>
    %14 = arith.addf %11, %13 : vector<8x32xf32>
    %c0_12 = arith.constant 0 : index
    %c0_13 = arith.constant 0 : index
    %15 = vector.load %arg7[%c0_12, %c0_13] : memref<8x32xf32, #tpu.memory_space<vmem>>, vector<8x32xf32>
    tpu.vector_store %arg7[%c0_12, %c0_13], %14 {strides = array<i32>} : memref<8x32xf32, #tpu.memory_space<vmem>>, vector<8x32xf32>,
    %c0_i32_14 = arith.constant 0 : i32
    %16 = arith.cmpi eq, %arg1, %c0_i32_14 : i32
    %17 = arith.extui %16 : i1 to i32
    %c0_i32_15 = arith.constant 0 : i32
    %18 = arith.cmpi ne, %17, %c0_i32_15 : i32
    scf.if %18 {
      %c0_16 = arith.constant 0 : index
      %c0_17 = arith.constant 0 : index
      %19 = vector.load %arg7[%c0_16, %c0_17] : memref<8x32xf32, #tpu.memory_space<vmem>>, vector<8x32xf32>
      %c0_18 = arith.constant 0 : index
      %c0_19 = arith.constant 0 : index
      %20 = vector.load %arg6[%c0_18, %c0_19] : memref<1x32xf32, #tpu.memory_space<vmem>>, vector<1x32xf32>
      %21 = vector.broadcast %20 : vector<1x32xf32> to vector<8x32xf32>
      %22 = arith.addf %19, %21 : vector<8x32xf32>
      %cst_20 = arith.constant 0.000000e+00 : f32
      %23 = vector.broadcast %cst_20 : f32 to vector<8x32xf32>
      %24 = arith.maximumf %22, %23 : vector<8x32xf32>
      %25 = arith.addf %3, %24 : vector<8x32xf32>
      %c0_21 = arith.constant 0 : index
      %c0_22 = arith.constant 0 : index
      %26 = vector.load %arg7[%c0_21, %c0_22] : memref<8x32xf32, #tpu.memory_space<vmem>>, vector<8x32xf32>
      tpu.vector_store %arg7[%c0_21, %c0_22], %25 {strides = array<i32>} : memref<8x32xf32, #tpu.memory_space<vmem>>, vector<8x32xf32>,
    } else {
    }
    return
  }
  func.func @transform_0(%arg0: i32, %arg1: i32) -> (i32, i32) {
    %c0_i32 = arith.constant 0 : i32
    %c0_i32_0 = arith.constant 0 : i32
    return %arg0, %c0_i32 : i32, i32
  }
  func.func @transform_1(%arg0: i32, %arg1: i32) -> (i32, i32) {
    %c0_i32 = arith.constant 0 : i32
    %c0_i32_0 = arith.constant 0 : i32
    return %c0_i32, %arg1 : i32, i32
  }
  func.func @transform_2(%arg0: i32, %arg1: i32) -> (i32, i32) {
    %c0_i32 = arith.constant 0 : i32
    %c0_i32_0 = arith.constant 0 : i32
    return %c0_i32, %arg1 : i32, i32
  }
  func.func @transform_3(%arg0: i32, %arg1: i32) -> (i32, i32) {
    %c0_i32 = arith.constant 0 : i32
    %c0_i32_0 = arith.constant 0 : i32
    return %arg1, %c0_i32 : i32, i32
  }
  func.func @transform_4(%arg0: i32, %arg1: i32) -> (i32, i32) {
    %c0_i32 = arith.constant 0 : i32
    %c0_i32_0 = arith.constant 0 : i32
    %c0_i32_1 = arith.constant 0 : i32
    return %c0_i32, %c0_i32_0 : i32, i32
  }
  func.func @transform_5(%arg0: i32, %arg1: i32) -> (i32, i32) {
    %c0_i32 = arith.constant 0 : i32
    %c0_i32_0 = arith.constant 0 : i32
    return %arg0, %c0_i32 : i32, i32
  }
}

</mosaic_0001>

<bundles_post_ra>
// kernel: tpu_custom_call.1
= control target key start
LH: loop header
LB: loop body
LE: loop exit
PB: predicated region body
PF: predicated region fallthrough
CT: control target
= control target key end

     0   :  { %10 = vsyncpa [#allocation3], 0  ;;  %s339_s0 = inlined_call_operand.hbm [shape: f32[8,32], index: 0, kind: input, shape index: {}]   ;;  %s340_s1 = inlined_call_operand.hbm [shape: f32[32,32], index: 1, kind: input, shape index: {}]   ;;  %s341_s2 = inlined_call_operand.vmem [shape: f32[1,32], index: 2, kind: input, shape index: {}]   ;;  %s342_s3 = inlined_call_operand.hbm [shape: f32[32,32], index: 3, kind: input, shape index: {}]   ;;  %s343_s4 = inlined_call_operand.vmem [shape: f32[1,32], index: 4, kind: input, shape index: {}]   ;;  %s344_s5 = inlined_call_operand.hbm [shape: f32[8,32], index: 5, kind: output, shape index: {}]  }
   0x1   :  { %11 = vsyncpa [#allocation6], 0  ;;  %s28_s20 = sshll.u32 %s340_s1, 4  ;;  %s29_s20 = int_to_ptr.hbm [resolvable:$true] %s28_s20 }
   0x2   :  { %12 = vsyncpa [#allocation4], 0  ;;  %s279_s21 = smov [#allocation5]   ;;  %s18_s25 = sshll.u32 %s339_s0, 4  ;;  %s19_s25 = int_to_ptr.hbm [resolvable:$true] %s18_s25 }
   0x3   :  { %s30_s22 = sshll.u32 %s279_s21, 4  ;;  %s280_s26 = smov 128   ;;  %s31_s22 = int_to_ptr.vmem [resolvable:$true] %s30_s22 }
   0x4   :  { %s281_s27 = smov 8   ;;  %s282_s28 = smov [#allocation2]  }
   0x5   :  { %36 = dma.hbm_to_vmem [thread:$0]  %s29_s20, 512, %s31_s22, [#allocation6], %s280_s26, %s280_s26, %s281_s27  }
   0x6   :  { %s20_s29 = sshll.u32 %s282_s28, 4  ;;  %s43_s7 = sshll.u32 %s342_s3, 4  ;;  %s21_s29 = int_to_ptr.vmem [resolvable:$true] %s20_s29  ;;  %s44_s7 = int_to_ptr.hbm [resolvable:$true] %s43_s7 }
   0x7   :  { %23 = dma.hbm_to_vmem [thread:$0]  %s19_s25, 128, %s21_s29, [#allocation3]  }
   0x8   :  { %s283_s1 = smov [#allocation7]  }
   0x9   :  { %s45_s8 = sshll.u32 %s283_s1, 4  ;;  %s46_s8 = int_to_ptr.vmem [resolvable:$true] %s45_s8 }
   0xa   :  { %51 = dma.hbm_to_vmem [thread:$0]  %s44_s7, 512, %s46_s8, [#allocation6], %s280_s26, %s280_s26, %s281_s27  }
   0xb   :  { %273 = dma.done.wait [#allocation3], 128  }
   0xc   :  { %274 = vsyncadd [#allocation3], 4294967168 }
   0xd   :  { %275 = dma.done.wait [#allocation6], 1024  }
   0xe   :  { %276 = vsyncadd [#allocation6], 4294966272  ;;  %vm70_vm0 = vcmask 261120   ;;  %v284_v0 = vmov 0.0   ;;  %v76_v1 = vld [vmem:[#allocation5 + $0x18] sm:$0xff]  ;;  %v75_v2 = vld [vmem:[#allocation5 + $0x10] sm:$0xff] }
   0xf   :  { %71 = vst.msk [vmem:[#allocation8] sm:$0xff] %vm70_vm0, %v284_v0  ;;  %97 = vmatpush.msra.mxu0 %v76_v1  ;;  %v110_v3 = vld [vmem:[#allocation7 + $0x18] sm:$0xff]  ;;  %v74_v4 = vld [vmem:[#allocation5 + $0x8] sm:$0xff]  ;;  %v73_v5 = vld [vmem:[#allocation5] sm:$0xff]  ;;  %s285_s11 = smov [#allocation8]   ;;  %s155_s14 = sshll.u32 %s344_s5, 4  ;;  %s156_s14 = int_to_ptr.hbm [resolvable:$true] %s155_s14 }
  0x10   :  { %126 = vmatpush.msra.mxu1 %v110_v3  ;;  %v72_v6 = vld [vmem:[#allocation2] sm:$0xff]  ;;  %v109_v7 = vld [vmem:[#allocation7 + $0x10] sm:$0xff]  ;;  %v108_v8 = vld [vmem:[#allocation7 + $0x8] sm:$0xff]  ;;  %s153_s12 = sshll.u32 %s285_s11, 4  ;;  %s154_s12 = int_to_ptr.vmem [resolvable:$true] %s153_s12 }
  0x11   :  { %98 = vmatpush.msra.mxu0 %v75_v2  ;;  %v107_v9 = vld [vmem:[#allocation7] sm:$0xff]  ;;  %v175_v10 = vld [vmem:[%s341_s2] ss:$0 sm:$0xff] }
  0x12   :  { %127 = vmatpush.msra.mxu1 %v109_v7  ;;  %v176_v17 = vld [vmem:[%s343_s4] ss:$0 sm:$0xff] }
  0x13   :  { %99 = vmatpush.msra.mxu0 %v74_v4 }
  0x14   :  { %128 = vmatpush.msra.mxu1 %v108_v8 }
  0x15   :  { %100 = vmatpush.msra.mxu0 %v73_v5 }
  0x16   :  { %166 = vmatmul.msk.f32.vlgmr.msra.gmra.mxu0 %vm70_vm0, %v72_v6  ;;  %129 = vmatpush.msra.mxu1 %v107_v9  ;;  %v106_v14 = vld [vmem:[#allocation8] sm:$0xff] }
  0x93   :  { %v102_v11 = vpop.f32.mrf.mxu0 }
  0x94   :  { %v103_v12 = vadd.f32 %v175_v10, %v102_v11 }
  0x96   :  { %v105_v13 = vmax.f32 %v103_v12, 0.0 }
  0x98   :  { %167 = vmatmul.msk.f32.vlgmr.msra.gmra.mxu1 %vm70_vm0, %v105_v13 }
 0x115   :  { %v131_v15 = vpop.f32.mrf.mxu1 }
 0x116   :  { %v134_v16 = vadd.f32 %v131_v15, %v106_v14 }
 0x118   :  { %135 = vst.msk [vmem:[#allocation8] sm:$0xff] %vm70_vm0, %v134_v16 }
 0x11f   :  { %v139_v18 = vld [vmem:[#allocation8] sm:$0xff] }
 0x120   :  { %v144_v19 = vadd.f32 %v176_v17, %v139_v18 }
 0x122   :  { %v145_v20 = vmax.f32 %v144_v19, 0.0 }
 0x124   :  { %v146_v21 = vadd.f32 %v145_v20, %v72_v6 }
 0x126   :  { %147 = vst.msk [vmem:[#allocation8] sm:$0xff] %vm70_vm0, %v146_v21 }
 0x127   :  { %158 = dma.vmem_to_hbm [thread:$0]  %s154_s12, 128, %s156_s14, [#allocation4]  }
 0x128   :  { %277 = dma.done.wait [#allocation4], 128  }
 0x129   :  { %278 = vsyncadd [#allocation4], 4294967168 }
 0x12a   :  { %163 = vsyncpa [#allocation3], 1 }
 0x12b   :  { %164 = vsyncpa [#allocation6], 1 }
 0x12c   :  { %165 = vsyncpa [#allocation4], 1 }

</bundles_post_ra>
